<compile_context>
chip_gen: v7x
topology: tpu7x:2x2x1
jax: 0.10.0
libtpu: 0.0.40
codegen_flags: <defaults>
</compile_context>

<pallas_src>
import functools

import jax
import jax.numpy as jnp
from jax import lax
from jax.experimental import pallas as pl
from jax.experimental.pallas import tpu as pltpu


# ----------------------------------------------------------------------------
# Fused qkv-projection + attention + output-projection kernel.
# One grid step handles one (batch, head) pair.
# ----------------------------------------------------------------------------
def _fused_attention_kernel(x_ref, wk_ref, bk_ref, wv_ref, bv_ref, wp_ref,
                            bp_ref, out_ref, attn_ref, acc_ref, *,
                            scale, layerth, n_tokens, channels,
                            matmul_dtype, lambd=4.0, n_iters=5):
    """Refs:
      x_ref    (1, N, C)      input activations for batch b (resident over h)
      wk_ref   (1, C, hd)     per-head k-projection weight (pre-packed)
      bk_ref   (1, 1, hd)     per-head k bias
      wv_ref   (1, C, hd)     per-head v-projection weight
      bv_ref   (1, 1, hd)     per-head v bias
      wp_ref   (1, hd, C)     per-head slice of the output projection weight
      bp_ref   (1, C)         output projection bias
      out_ref  (1, N, C)      projected output (accumulated over heads)
      attn_ref (1, 1, N, N)   attention matrix for this (batch, head)
      acc_ref  (N, C) f32     VMEM accumulator for the output projection
    """
    h = pl.program_id(1)
    num_heads = pl.num_programs(1)

    x = x_ref[0].astype(matmul_dtype)                          # (N, C)

    # --- fused qkv projection for this head (bf16 MXU, f32 accumulate) ------
    k = jnp.dot(x, wk_ref[0], preferred_element_type=jnp.float32) + bk_ref[0]
    v = jnp.dot(x, wv_ref[0], preferred_element_type=jnp.float32) + bv_ref[0]
    v_mm = v.astype(matmul_dtype)

    def kkt_softmax(kk):
        # softmax(kk @ kk^T * scale): contract the last dims of both operands
        # so no explicit transpose is materialized.
        kb = kk.astype(matmul_dtype)
        s = lax.dot_general(kb, kb, (((1,), (1,)), ((), ())),
                            preferred_element_type=jnp.float32) * scale
        return jax.nn.softmax(s, axis=-1)

    if layerth == 0:
        # ---- robust-PCA style iterative attention ---------------------------
        # mu = N*C/4 / ||k||_1  (L1 norm over this (batch, head) slice).
        mu = (n_tokens * channels / 4.0) / jnp.sum(jnp.abs(k))
        inv_mu = 1.0 / mu                 # hoisted: multiply instead of divide
        thr = lambd * mu                  # hoisted out of the loop

        def soft_threshold(s):
            # == (s - thr)*(s >= thr) + (s + thr)*(s <= -thr)
            return s - jnp.clip(s, -thr, thr)

        l = jnp.zeros_like(k)
        y = jnp.zeros_like(k)
        for _ in range(n_iters):          # statically unrolled (5 iterations)
            s = soft_threshold(k - l + y * inv_mu)
            k2 = k - s - y * inv_mu
            a = kkt_softmax(k2)
            l = jnp.dot(a.astype(matmul_dtype), v_mm,
                        preferred_element_type=jnp.float32)
            y = y + mu * (k - l - s)
        s = soft_threshold(k - l + y * inv_mu)
        k2 = k - s - y * inv_mu
        a = kkt_softmax(k2)
        o = jnp.dot(a.astype(matmul_dtype), v_mm,
                    preferred_element_type=jnp.float32)
        # (the final y update in the torch code does not affect the outputs)
    else:
        # ---- standard k-k attention -----------------------------------------
        a = kkt_softmax(k)
        o = jnp.dot(a.astype(matmul_dtype), v_mm,
                    preferred_element_type=jnp.float32)

    attn_ref[0, 0] = a.astype(attn_ref.dtype)

    # --- fused output projection: reduce over the head grid axis ------------
    @pl.when(h == 0)
    def _init():
        acc_ref[...] = jnp.zeros_like(acc_ref)

    acc_ref[...] += jnp.dot(o.astype(matmul_dtype), wp_ref[0],
                            preferred_element_type=jnp.float32)

    @pl.when(h == num_heads - 1)
    def _finalize():
        out_ref[0] = (acc_ref[...] + bp_ref[...]).astype(out_ref.dtype)


# ----------------------------------------------------------------------------
# Module wrapper
# ----------------------------------------------------------------------------
class AttentionPallas:
    """Pallas TPU port of the PyTorch `Attention` module (forward only)."""

    def __init__(self, dim, heads, dropout=0.0, layerth=None, decoder=False,
                 key=None, matmul_dtype=jnp.bfloat16):
        assert dim % heads == 0
        self.dim = dim
        self.heads = heads
        self.head_dim = dim // heads
        self.scale = self.head_dim ** (-0.5)
        self.layerth = layerth
        self.decoder = decoder
        self.dropout = dropout            # p = 0.0 in this script -> identity
        self.matmul_dtype = matmul_dtype  # bf16 operands, f32 accumulation

        key = jax.random.PRNGKey(42) if key is None else key
        k1, k2, k3, k4 = jax.random.split(key, 4)
        bound = 1.0 / (dim ** 0.5)
        # nn.Linear(dim, 2*dim): weight (2*dim, dim), bias (2*dim,)
        self.qkv_w = jax.random.uniform(k1, (2 * dim, dim), jnp.float32, -bound, bound)
        self.qkv_b = jax.random.uniform(k2, (2 * dim,), jnp.float32, -bound, bound)
        # nn.Linear(dim, dim)
        self.proj_w = jax.random.uniform(k3, (dim, dim), jnp.float32, -bound, bound)
        self.proj_b = jax.random.uniform(k4, (dim,), jnp.float32, -bound, bound)

        # --- pre-pack per-head weight slices ONCE (no per-call transposes) ---
        H, hd, C = heads, self.head_dim, dim
        # k head h uses rows [h*hd, (h+1)*hd) of qkv_w            -> (H, C, hd)
        self.wk = jnp.transpose(self.qkv_w[:C].reshape(H, hd, C),
                                (0, 2, 1)).astype(matmul_dtype)
        # v head h uses rows [C + h*hd, C + (h+1)*hd) of qkv_w    -> (H, C, hd)
        self.wv = jnp.transpose(self.qkv_w[C:].reshape(H, hd, C),
                                (0, 2, 1)).astype(matmul_dtype)
        self.bk = self.qkv_b[:C].reshape(H, 1, hd).astype(jnp.float32)
        self.bv = self.qkv_b[C:].reshape(H, 1, hd).astype(jnp.float32)
        # proj: y = sum_h x_h @ proj_w[:, h*hd:(h+1)*hd].T        -> (H, hd, C)
        self.wp = jnp.transpose(self.proj_w).reshape(H, hd, C).astype(matmul_dtype)
        self.bp = self.proj_b.reshape(1, C).astype(jnp.float32)

    def __call__(self, x, mask=None):
        B, N, C = x.shape
        assert C == self.dim
        H, hd = self.heads, self.head_dim

        kernel = functools.partial(
            _fused_attention_kernel,
            scale=self.scale, layerth=self.layerth,
            n_tokens=N, channels=C, matmul_dtype=self.matmul_dtype)

        out, attn = pl.pallas_call(
            kernel,
            out_shape=(
                jax.ShapeDtypeStruct((B, N, C), x.dtype),
                jax.ShapeDtypeStruct((B, H, N, N), jnp.float32),
            ),
            grid_spec=pltpu.PrefetchScalarGridSpec(
                num_scalar_prefetch=0,
                grid=(B, H),
                in_specs=[
                    pl.BlockSpec((1, N, C), lambda b, h: (b, 0, 0)),    # x (resident over h)
                    pl.BlockSpec((1, C, hd), lambda b, h: (h, 0, 0)),   # wk
                    pl.BlockSpec((1, 1, hd), lambda b, h: (h, 0, 0)),   # bk
                    pl.BlockSpec((1, C, hd), lambda b, h: (h, 0, 0)),   # wv
                    pl.BlockSpec((1, 1, hd), lambda b, h: (h, 0, 0)),   # bv
                    pl.BlockSpec((1, hd, C), lambda b, h: (h, 0, 0)),   # wp
                    pl.BlockSpec((1, C), lambda b, h: (0, 0)),          # bp
                ],
                out_specs=[
                    pl.BlockSpec((1, N, C), lambda b, h: (b, 0, 0)),        # projected out
                    pl.BlockSpec((1, 1, N, N), lambda b, h: (b, h, 0, 0)),  # attn
                ],
                scratch_shapes=[pltpu.VMEM((N, C), jnp.float32)],
            ),
            # Batch axis is parallel (megacore sharding on v7x). The head axis
            # carries the output-projection reduction -> "arbitrary".
            compiler_params=pltpu.CompilerParams(
                dimension_semantics=("parallel", "arbitrary")),
        )(x, self.wk, self.bk, self.wv, self.bv, self.wp, self.bp)
        return out, attn


# ----------------------------------------------------------------------------
# Pure-JAX reference (mirrors the PyTorch forward), used only for checking.
# ----------------------------------------------------------------------------
def _reference_forward(x, qkv_w, qkv_b, proj_w, proj_b, heads, scale, layerth):
    B, N, C = x.shape
    hd = C // heads
    qkv = x @ qkv_w.T + qkv_b                                    # (B, N, 2C)
    qkv = qkv.reshape(B, N, 2, heads, hd).transpose(2, 0, 3, 1, 4)
    k, v = qkv[0], qkv[1]                                        # (B, H, N, hd)

    def soft_threshold(s, thr):
        more = (s >= thr).astype(s.dtype)
        less = (s <= -thr).astype(s.dtype)
        return (s - thr) * more + (s + thr) * less

    if layerth == 0:
        lambd = 4.0
        mu = (N * C / 4.0) / jnp.sum(jnp.abs(k), axis=(-2, -1), keepdims=True)
        l = jnp.zeros_like(k)
        y = jnp.zeros_like(k)
        for _ in range(5):
            s = soft_threshold(k - l + y / mu, lambd * mu)
            k2 = k - s - y / mu
            l = jax.nn.softmax(k2 @ jnp.swapaxes(k2, -1, -2) * scale, axis=-1) @ v
            y = y + mu * (k - l - s)
        s = soft_threshold(k - l + y / mu, lambd * mu)
        k2 = k - s - y / mu
        attn = jax.nn.softmax(k2 @ jnp.swapaxes(k2, -1, -2) * scale, axis=-1)
    else:
        attn = jax.nn.softmax(k @ jnp.swapaxes(k, -1, -2) * scale, axis=-1)
    xo = attn @ v
    xo = xo.transpose(0, 2, 1, 3).reshape(B, N, C)
    xo = xo @ proj_w.T + proj_b
    return xo, attn


if __name__ == "__main__":
    B, N, dim, heads = 2, 8, 32, 4
    key = jax.random.PRNGKey(0)
    kx, kp = jax.random.split(key)
    x = jax.random.normal(kx, (B, N, dim), dtype=jnp.float32)

    for layerth in (0, 1):   # 0 = robust/RPC path, 1 = standard k-k attention
        mod = AttentionPallas(dim, heads, dropout=0.0, layerth=layerth, key=kp)
        out, attn = mod(x)
        jax.block_until_ready((out, attn))

        assert out.shape == (B, N, dim) and attn.shape == (B, heads, N, N)
        assert bool(jnp.all(jnp.isfinite(out))) and bool(jnp.all(jnp.isfinite(attn)))

        ref_out, ref_attn = _reference_forward(
            x, mod.qkv_w, mod.qkv_b, mod.proj_w, mod.proj_b,
            heads, mod.scale, layerth)
        # Loose tolerance: kernel uses bf16 MXU operands (f32 accumulation).
        assert bool(jnp.allclose(out, ref_out, rtol=1e-1, atol=1e-1))
        assert bool(jnp.allclose(attn, ref_attn, rtol=1e-1, atol=1e-1))

    print("KERNEL_OK")
</pallas_src>

<mosaic_0001>
module attributes {stable_mosaic.version = 11 : i64} {
  func.func @_fused_attention_kernel(%arg0: i32, %arg1: i32, %arg2: memref<1x8x32xf32, #tpu.memory_space<vmem>>, %arg3: memref<1x32x8xbf16, #tpu.memory_space<vmem>>, %arg4: memref<1x1x8xf32, #tpu.memory_space<vmem>>, %arg5: memref<1x32x8xbf16, #tpu.memory_space<vmem>>, %arg6: memref<1x1x8xf32, #tpu.memory_space<vmem>>, %arg7: memref<1x8x32xbf16, #tpu.memory_space<vmem>>, %arg8: memref<1x32xf32, #tpu.memory_space<vmem>>, %arg9: memref<1x8x32xf32, #tpu.memory_space<vmem>>, %arg10: memref<1x1x8x8xf32, #tpu.memory_space<vmem>>, %arg11: memref<8x32xf32, #tpu.memory_space<vmem>>) attributes {dimension_semantics = [#tpu.dimension_semantics<parallel>, #tpu.dimension_semantics<arbitrary>], iteration_bounds = array<i64: 2, 4>, scalar_prefetch = 0 : i64, scratch_operands = 1 : i64, tpu.core_type = #tpu.core_type<tc>, window_params = [{transform_indices = @transform_0, window_bounds = array<i64: 1, 8, 32>}, {transform_indices = @transform_1, window_bounds = array<i64: 1, 32, 8>}, {transform_indices = @transform_2, window_bounds = array<i64: 1, 1, 8>}, {transform_indices = @transform_3, window_bounds = array<i64: 1, 32, 8>}, {transform_indices = @transform_4, window_bounds = array<i64: 1, 1, 8>}, {transform_indices = @transform_5, window_bounds = array<i64: 1, 8, 32>}, {pipeline_mode = #tpu.pipeline_mode<synchronous>, transform_indices = @transform_6, window_bounds = array<i64: 1, 32>}, {transform_indices = @transform_7, window_bounds = array<i64: 1, 8, 32>}, {transform_indices = @transform_8, window_bounds = array<i64: 1, 1, 8, 8>}]} {
    %c0 = arith.constant 0 : index
    %c0_0 = arith.constant 0 : index
    %c0_1 = arith.constant 0 : index
    %0 = vector.load %arg2[%c0, %c0_0, %c0_1] : memref<1x8x32xf32, #tpu.memory_space<vmem>>, vector<1x8x32xf32>
    %1 = vector.shape_cast %0 : vector<1x8x32xf32> to vector<8x32xf32>
    %2 = arith.truncf %1 : vector<8x32xf32> to vector<8x32xbf16>
    %c0_2 = arith.constant 0 : index
    %c0_3 = arith.constant 0 : index
    %c0_4 = arith.constant 0 : index
    %3 = vector.load %arg3[%c0_2, %c0_3, %c0_4] : memref<1x32x8xbf16, #tpu.memory_space<vmem>>, vector<1x32x8xbf16>
    %4 = vector.shape_cast %3 : vector<1x32x8xbf16> to vector<32x8xbf16>
    %cst = arith.constant dense<0.000000e+00> : vector<8x8xf32>
    %5 = tpu.matmul %2, %4, %cst {dimension_numbers = #tpu.dot_dimension_numbers<[1], [0], [0], [1], [0, 0, 1, 1], [], []>} : vector<8x32xbf16>, vector<32x8xbf16>, vector<8x8xf32> -> vector<8x8xf32>
    %c0_5 = arith.constant 0 : index
    %c0_6 = arith.constant 0 : index
    %c0_7 = arith.constant 0 : index
    %6 = vector.load %arg4[%c0_5, %c0_6, %c0_7] : memref<1x1x8xf32, #tpu.memory_space<vmem>>, vector<1x1x8xf32>
    %7 = vector.shape_cast %6 : vector<1x1x8xf32> to vector<1x8xf32>
    %8 = vector.broadcast %7 : vector<1x8xf32> to vector<8x8xf32>
    %9 = arith.addf %5, %8 : vector<8x8xf32>
    %c0_8 = arith.constant 0 : index
    %c0_9 = arith.constant 0 : index
    %c0_10 = arith.constant 0 : index
    %10 = vector.load %arg5[%c0_8, %c0_9, %c0_10] : memref<1x32x8xbf16, #tpu.memory_space<vmem>>, vector<1x32x8xbf16>
    %11 = vector.shape_cast %10 : vector<1x32x8xbf16> to vector<32x8xbf16>
    %cst_11 = arith.constant dense<0.000000e+00> : vector<8x8xf32>
    %12 = tpu.matmul %2, %11, %cst_11 {dimension_numbers = #tpu.dot_dimension_numbers<[1], [0], [0], [1], [0, 0, 1, 1], [], []>} : vector<8x32xbf16>, vector<32x8xbf16>, vector<8x8xf32> -> vector<8x8xf32>
    %c0_12 = arith.constant 0 : index
    %c0_13 = arith.constant 0 : index
    %c0_14 = arith.constant 0 : index
    %13 = vector.load %arg6[%c0_12, %c0_13, %c0_14] : memref<1x1x8xf32, #tpu.memory_space<vmem>>, vector<1x1x8xf32>
    %14 = vector.shape_cast %13 : vector<1x1x8xf32> to vector<1x8xf32>
    %15 = vector.broadcast %14 : vector<1x8xf32> to vector<8x8xf32>
    %16 = arith.addf %12, %15 : vector<8x8xf32>
    %17 = arith.truncf %16 : vector<8x8xf32> to vector<8x8xbf16>
    %18 = math.absf %9 : vector<8x8xf32>
    %19 = vector.shape_cast %18 : vector<8x8xf32> to vector<1x8x8xf32>
    %cst_15 = arith.constant dense<0.000000e+00> : vector<1xf32>
    %20 = vector.multi_reduction <add>, %19, %cst_15 [1, 2] : vector<1x8x8xf32> to vector<1xf32>
    %21 = vector.shape_cast %20 : vector<1xf32> to vector<1x1x1xf32>
    %22 = vector.extract %21[0, 0, 0] : f32 from vector<1x1x1xf32>
    %cst_16 = arith.constant 6.400000e+01 : f32
    %23 = arith.divf %cst_16, %22 : f32
    %cst_17 = arith.constant 1.000000e+00 : f32
    %24 = arith.divf %cst_17, %23 : f32
    %cst_18 = arith.constant 4.000000e+00 : f32
    %25 = arith.mulf %cst_18, %23 : f32
    %cst_19 = arith.constant 0.000000e+00 : f32
    %26 = vector.broadcast %cst_19 : f32 to vector<8x8xf32>
    %cst_20 = arith.constant 0.000000e+00 : f32
    %27 = vector.broadcast %cst_20 : f32 to vector<8x8xf32>
    %28 = arith.subf %9, %26 : vector<8x8xf32>
    %29 = vector.broadcast %24 : f32 to vector<8x8xf32>
    %30 = arith.mulf %27, %29 : vector<8x8xf32>
    %31 = arith.addf %28, %30 : vector<8x8xf32>
    %cst_21 = arith.constant 0.000000e+00 : f32
    %32 = arith.subf %cst_21, %25 : f32
    %33 = vector.broadcast %32 : f32 to vector<8x8xf32>
    %34 = arith.maximumf %33, %31 : vector<8x8xf32>
    %35 = vector.broadcast %25 : f32 to vector<8x8xf32>
    %36 = arith.minimumf %35, %34 : vector<8x8xf32>
    %37 = arith.subf %31, %36 : vector<8x8xf32>
    %38 = arith.subf %9, %37 : vector<8x8xf32>
    %39 = vector.broadcast %24 : f32 to vector<8x8xf32>
    %40 = arith.mulf %27, %39 : vector<8x8xf32>
    %41 = arith.subf %38, %40 : vector<8x8xf32>
    %42 = arith.truncf %41 : vector<8x8xf32> to vector<8x8xbf16>
    %cst_22 = arith.constant dense<0.000000e+00> : vector<8x8xf32>
    %43 = tpu.matmul %42, %42, %cst_22 {dimension_numbers = #tpu.dot_dimension_numbers<[1], [1], [0], [0], [0, 0, 1, 0], [], []>} : vector<8x8xbf16>, vector<8x8xbf16>, vector<8x8xf32> -> vector<8x8xf32>
    %cst_23 = arith.constant 0.353553385 : f32
    %44 = vector.broadcast %cst_23 : f32 to vector<8x8xf32>
    %45 = arith.mulf %43, %44 : vector<8x8xf32>
    %cst_24 = arith.constant dense<0xFF800000> : vector<8xf32>
    %46 = vector.multi_reduction <maximumf>, %45, %cst_24 [1] : vector<8x8xf32> to vector<8xf32>
    %cst_25 = arith.constant 0xFF800000 : f32
    %47 = vector.broadcast %cst_25 : f32 to vector<8xf32>
    %48 = arith.maximumf %47, %46 : vector<8xf32>
    %49 = vector.shape_cast %48 : vector<8xf32> to vector<8x1xf32>
    %50 = vector.broadcast %49 : vector<8x1xf32> to vector<8x8xf32>
    %51 = arith.subf %45, %50 : vector<8x8xf32>
    %52 = math.exp %51 : vector<8x8xf32>
    %cst_26 = arith.constant dense<0.000000e+00> : vector<8xf32>
    %53 = vector.multi_reduction <add>, %52, %cst_26 [1] : vector<8x8xf32> to vector<8xf32>
    %54 = vector.shape_cast %53 : vector<8xf32> to vector<8x1xf32>
    %55 = vector.broadcast %54 : vector<8x1xf32> to vector<8x8xf32>
    %56 = arith.divf %52, %55 : vector<8x8xf32>
    %57 = arith.truncf %56 : vector<8x8xf32> to vector<8x8xbf16>
    %cst_27 = arith.constant dense<0.000000e+00> : vector<8x8xf32>
    %58 = tpu.matmul %57, %17, %cst_27 {dimension_numbers = #tpu.dot_dimension_numbers<[1], [0], [0], [1], [0, 0, 1, 1], [], []>} : vector<8x8xbf16>, vector<8x8xbf16>, vector<8x8xf32> -> vector<8x8xf32>
    %59 = arith.subf %9, %58 : vector<8x8xf32>
    %60 = arith.subf %59, %37 : vector<8x8xf32>
    %61 = vector.broadcast %23 : f32 to vector<8x8xf32>
    %62 = arith.mulf %61, %60 : vector<8x8xf32>
    %63 = arith.addf %27, %62 : vector<8x8xf32>
    %64 = arith.subf %9, %58 : vector<8x8xf32>
    %65 = vector.broadcast %24 : f32 to vector<8x8xf32>
    %66 = arith.mulf %63, %65 : vector<8x8xf32>
    %67 = arith.addf %64, %66 : vector<8x8xf32>
    %cst_28 = arith.constant 0.000000e+00 : f32
    %68 = arith.subf %cst_28, %25 : f32
    %69 = vector.broadcast %68 : f32 to vector<8x8xf32>
    %70 = arith.maximumf %69, %67 : vector<8x8xf32>
    %71 = vector.broadcast %25 : f32 to vector<8x8xf32>
    %72 = arith.minimumf %71, %70 : vector<8x8xf32>
    %73 = arith.subf %67, %72 : vector<8x8xf32>
    %74 = arith.subf %9, %73 : vector<8x8xf32>
    %75 = vector.broadcast %24 : f32 to vector<8x8xf32>
    %76 = arith.mulf %63, %75 : vector<8x8xf32>
    %77 = arith.subf %74, %76 : vector<8x8xf32>
    %78 = arith.truncf %77 : vector<8x8xf32> to vector<8x8xbf16>
    %cst_29 = arith.constant dense<0.000000e+00> : vector<8x8xf32>
    %79 = tpu.matmul %78, %78, %cst_29 {dimension_numbers = #tpu.dot_dimension_numbers<[1], [1], [0], [0], [0, 0, 1, 0], [], []>} : vector<8x8xbf16>, vector<8x8xbf16>, vector<8x8xf32> -> vector<8x8xf32>
    %cst_30 = arith.constant 0.353553385 : f32
    %80 = vector.broadcast %cst_30 : f32 to vector<8x8xf32>
    %81 = arith.mulf %79, %80 : vector<8x8xf32>
    %cst_31 = arith.constant dense<0xFF800000> : vector<8xf32>
    %82 = vector.multi_reduction <maximumf>, %81, %cst_31 [1] : vector<8x8xf32> to vector<8xf32>
    %cst_32 = arith.constant 0xFF800000 : f32
    %83 = vector.broadcast %cst_32 : f32 to vector<8xf32>
    %84 = arith.maximumf %83, %82 : vector<8xf32>
    %85 = vector.shape_cast %84 : vector<8xf32> to vector<8x1xf32>
    %86 = vector.broadcast %85 : vector<8x1xf32> to vector<8x8xf32>
    %87 = arith.subf %81, %86 : vector<8x8xf32>
    %88 = math.exp %87 : vector<8x8xf32>
    %cst_33 = arith.constant dense<0.000000e+00> : vector<8xf32>
    %89 = vector.multi_reduction <add>, %88, %cst_33 [1] : vector<8x8xf32> to vector<8xf32>
    %90 = vector.shape_cast %89 : vector<8xf32> to vector<8x1xf32>
    %91 = vector.broadcast %90 : vector<8x1xf32> to vector<8x8xf32>
    %92 = arith.divf %88, %91 : vector<8x8xf32>
    %93 = arith.truncf %92 : vector<8x8xf32> to vector<8x8xbf16>
    %cst_34 = arith.constant dense<0.000000e+00> : vector<8x8xf32>
    %94 = tpu.matmul %93, %17, %cst_34 {dimension_numbers = #tpu.dot_dimension_numbers<[1], [0], [0], [1], [0, 0, 1, 1], [], []>} : vector<8x8xbf16>, vector<8x8xbf16>, vector<8x8xf32> -> vector<8x8xf32>
    %95 = arith.subf %9, %94 : vector<8x8xf32>
    %96 = arith.subf %95, %73 : vector<8x8xf32>
    %97 = vector.broadcast %23 : f32 to vector<8x8xf32>
    %98 = arith.mulf %97, %96 : vector<8x8xf32>
    %99 = arith.addf %63, %98 : vector<8x8xf32>
    %100 = arith.subf %9, %94 : vector<8x8xf32>
    %101 = vector.broadcast %24 : f32 to vector<8x8xf32>
    %102 = arith.mulf %99, %101 : vector<8x8xf32>
    %103 = arith.addf %100, %102 : vector<8x8xf32>
    %cst_35 = arith.constant 0.000000e+00 : f32
    %104 = arith.subf %cst_35, %25 : f32
    %105 = vector.broadcast %104 : f32 to vector<8x8xf32>
    %106 = arith.maximumf %105, %103 : vector<8x8xf32>
    %107 = vector.broadcast %25 : f32 to vector<8x8xf32>
    %108 = arith.minimumf %107, %106 : vector<8x8xf32>
    %109 = arith.subf %103, %108 : vector<8x8xf32>
    %110 = arith.subf %9, %109 : vector<8x8xf32>
    %111 = vector.broadcast %24 : f32 to vector<8x8xf32>
    %112 = arith.mulf %99, %111 : vector<8x8xf32>
    %113 = arith.subf %110, %112 : vector<8x8xf32>
    %114 = arith.truncf %113 : vector<8x8xf32> to vector<8x8xbf16>
    %cst_36 = arith.constant dense<0.000000e+00> : vector<8x8xf32>
    %115 = tpu.matmul %114, %114, %cst_36 {dimension_numbers = #tpu.dot_dimension_numbers<[1], [1], [0], [0], [0, 0, 1, 0], [], []>} : vector<8x8xbf16>, vector<8x8xbf16>, vector<8x8xf32> -> vector<8x8xf32>
    %cst_37 = arith.constant 0.353553385 : f32
    %116 = vector.broadcast %cst_37 : f32 to vector<8x8xf32>
    %117 = arith.mulf %115, %116 : vector<8x8xf32>
    %cst_38 = arith.constant dense<0xFF800000> : vector<8xf32>
    %118 = vector.multi_reduction <maximumf>, %117, %cst_38 [1] : vector<8x8xf32> to vector<8xf32>
    %cst_39 = arith.constant 0xFF800000 : f32
    %119 = vector.broadcast %cst_39 : f32 to vector<8xf32>
    %120 = arith.maximumf %119, %118 : vector<8xf32>
    %121 = vector.shape_cast %120 : vector<8xf32> to vector<8x1xf32>
    %122 = vector.broadcast %121 : vector<8x1xf32> to vector<8x8xf32>
    %123 = arith.subf %117, %122 : vector<8x8xf32>
    %124 = math.exp %123 : vector<8x8xf32>
    %cst_40 = arith.constant dense<0.000000e+00> : vector<8xf32>
    %125 = vector.multi_reduction <add>, %124, %cst_40 [1] : vector<8x8xf32> to vector<8xf32>
    %126 = vector.shape_cast %125 : vector<8xf32> to vector<8x1xf32>
    %127 = vector.broadcast %126 : vector<8x1xf32> to vector<8x8xf32>
    %128 = arith.divf %124, %127 : vector<8x8xf32>
    %129 = arith.truncf %128 : vector<8x8xf32> to vector<8x8xbf16>
    %cst_41 = arith.constant dense<0.000000e+00> : vector<8x8xf32>
    %130 = tpu.matmul %129, %17, %cst_41 {dimension_numbers = #tpu.dot_dimension_numbers<[1], [0], [0], [1], [0, 0, 1, 1], [], []>} : vector<8x8xbf16>, vector<8x8xbf16>, vector<8x8xf32> -> vector<8x8xf32>
    %131 = arith.subf %9, %130 : vector<8x8xf32>
    %132 = arith.subf %131, %109 : vector<8x8xf32>
    %133 = vector.broadcast %23 : f32 to vector<8x8xf32>
    %134 = arith.mulf %133, %132 : vector<8x8xf32>
    %135 = arith.addf %99, %134 : vector<8x8xf32>
    %136 = arith.subf %9, %130 : vector<8x8xf32>
    %137 = vector.broadcast %24 : f32 to vector<8x8xf32>
    %138 = arith.mulf %135, %137 : vector<8x8xf32>
    %139 = arith.addf %136, %138 : vector<8x8xf32>
    %cst_42 = arith.constant 0.000000e+00 : f32
    %140 = arith.subf %cst_42, %25 : f32
    %141 = vector.broadcast %140 : f32 to vector<8x8xf32>
    %142 = arith.maximumf %141, %139 : vector<8x8xf32>
    %143 = vector.broadcast %25 : f32 to vector<8x8xf32>
    %144 = arith.minimumf %143, %142 : vector<8x8xf32>
    %145 = arith.subf %139, %144 : vector<8x8xf32>
    %146 = arith.subf %9, %145 : vector<8x8xf32>
    %147 = vector.broadcast %24 : f32 to vector<8x8xf32>
    %148 = arith.mulf %135, %147 : vector<8x8xf32>
    %149 = arith.subf %146, %148 : vector<8x8xf32>
    %150 = arith.truncf %149 : vector<8x8xf32> to vector<8x8xbf16>
    %cst_43 = arith.constant dense<0.000000e+00> : vector<8x8xf32>
    %151 = tpu.matmul %150, %150, %cst_43 {dimension_numbers = #tpu.dot_dimension_numbers<[1], [1], [0], [0], [0, 0, 1, 0], [], []>} : vector<8x8xbf16>, vector<8x8xbf16>, vector<8x8xf32> -> vector<8x8xf32>
    %cst_44 = arith.constant 0.353553385 : f32
    %152 = vector.broadcast %cst_44 : f32 to vector<8x8xf32>
    %153 = arith.mulf %151, %152 : vector<8x8xf32>
    %cst_45 = arith.constant dense<0xFF800000> : vector<8xf32>
    %154 = vector.multi_reduction <maximumf>, %153, %cst_45 [1] : vector<8x8xf32> to vector<8xf32>
    %cst_46 = arith.constant 0xFF800000 : f32
    %155 = vector.broadcast %cst_46 : f32 to vector<8xf32>
    %156 = arith.maximumf %155, %154 : vector<8xf32>
    %157 = vector.shape_cast %156 : vector<8xf32> to vector<8x1xf32>
    %158 = vector.broadcast %157 : vector<8x1xf32> to vector<8x8xf32>
    %159 = arith.subf %153, %158 : vector<8x8xf32>
    %160 = math.exp %159 : vector<8x8xf32>
    %cst_47 = arith.constant dense<0.000000e+00> : vector<8xf32>
    %161 = vector.multi_reduction <add>, %160, %cst_47 [1] : vector<8x8xf32> to vector<8xf32>
    %162 = vector.shape_cast %161 : vector<8xf32> to vector<8x1xf32>
    %163 = vector.broadcast %162 : vector<8x1xf32> to vector<8x8xf32>
    %164 = arith.divf %160, %163 : vector<8x8xf32>
    %165 = arith.truncf %164 : vector<8x8xf32> to vector<8x8xbf16>
    %cst_48 = arith.constant dense<0.000000e+00> : vector<8x8xf32>
    %166 = tpu.matmul %165, %17, %cst_48 {dimension_numbers = #tpu.dot_dimension_numbers<[1], [0], [0], [1], [0, 0, 1, 1], [], []>} : vector<8x8xbf16>, vector<8x8xbf16>, vector<8x8xf32> -> vector<8x8xf32>
    %167 = arith.subf %9, %166 : vector<8x8xf32>
    %168 = arith.subf %167, %145 : vector<8x8xf32>
    %169 = vector.broadcast %23 : f32 to vector<8x8xf32>
    %170 = arith.mulf %169, %168 : vector<8x8xf32>
    %171 = arith.addf %135, %170 : vector<8x8xf32>
    %172 = arith.subf %9, %166 : vector<8x8xf32>
    %173 = vector.broadcast %24 : f32 to vector<8x8xf32>
    %174 = arith.mulf %171, %173 : vector<8x8xf32>
    %175 = arith.addf %172, %174 : vector<8x8xf32>
    %cst_49 = arith.constant 0.000000e+00 : f32
    %176 = arith.subf %cst_49, %25 : f32
    %177 = vector.broadcast %176 : f32 to vector<8x8xf32>
    %178 = arith.maximumf %177, %175 : vector<8x8xf32>
    %179 = vector.broadcast %25 : f32 to vector<8x8xf32>
    %180 = arith.minimumf %179, %178 : vector<8x8xf32>
    %181 = arith.subf %175, %180 : vector<8x8xf32>
    %182 = arith.subf %9, %181 : vector<8x8xf32>
    %183 = vector.broadcast %24 : f32 to vector<8x8xf32>
    %184 = arith.mulf %171, %183 : vector<8x8xf32>
    %185 = arith.subf %182, %184 : vector<8x8xf32>
    %186 = arith.truncf %185 : vector<8x8xf32> to vector<8x8xbf16>
    %cst_50 = arith.constant dense<0.000000e+00> : vector<8x8xf32>
    %187 = tpu.matmul %186, %186, %cst_50 {dimension_numbers = #tpu.dot_dimension_numbers<[1], [1], [0], [0], [0, 0, 1, 0], [], []>} : vector<8x8xbf16>, vector<8x8xbf16>, vector<8x8xf32> -> vector<8x8xf32>
    %cst_51 = arith.constant 0.353553385 : f32
    %188 = vector.broadcast %cst_51 : f32 to vector<8x8xf32>
    %189 = arith.mulf %187, %188 : vector<8x8xf32>
    %cst_52 = arith.constant dense<0xFF800000> : vector<8xf32>
    %190 = vector.multi_reduction <maximumf>, %189, %cst_52 [1] : vector<8x8xf32> to vector<8xf32>
    %cst_53 = arith.constant 0xFF800000 : f32
    %191 = vector.broadcast %cst_53 : f32 to vector<8xf32>
    %192 = arith.maximumf %191, %190 : vector<8xf32>
    %193 = vector.shape_cast %192 : vector<8xf32> to vector<8x1xf32>
    %194 = vector.broadcast %193 : vector<8x1xf32> to vector<8x8xf32>
    %195 = arith.subf %189, %194 : vector<8x8xf32>
    %196 = math.exp %195 : vector<8x8xf32>
    %cst_54 = arith.constant dense<0.000000e+00> : vector<8xf32>
    %197 = vector.multi_reduction <add>, %196, %cst_54 [1] : vector<8x8xf32> to vector<8xf32>
    %198 = vector.shape_cast %197 : vector<8xf32> to vector<8x1xf32>
    %199 = vector.broadcast %198 : vector<8x1xf32> to vector<8x8xf32>
    %200 = arith.divf %196, %199 : vector<8x8xf32>
    %201 = arith.truncf %200 : vector<8x8xf32> to vector<8x8xbf16>
    %cst_55 = arith.constant dense<0.000000e+00> : vector<8x8xf32>
    %202 = tpu.matmul %201, %17, %cst_55 {dimension_numbers = #tpu.dot_dimension_numbers<[1], [0], [0], [1], [0, 0, 1, 1], [], []>} : vector<8x8xbf16>, vector<8x8xbf16>, vector<8x8xf32> -> vector<8x8xf32>
    %203 = arith.subf %9, %202 : vector<8x8xf32>
    %204 = arith.subf %203, %181 : vector<8x8xf32>
    %205 = vector.broadcast %23 : f32 to vector<8x8xf32>
    %206 = arith.mulf %205, %204 : vector<8x8xf32>
    %207 = arith.addf %171, %206 : vector<8x8xf32>
    %208 = arith.subf %9, %202 : vector<8x8xf32>
    %209 = vector.broadcast %24 : f32 to vector<8x8xf32>
    %210 = arith.mulf %207, %209 : vector<8x8xf32>
    %211 = arith.addf %208, %210 : vector<8x8xf32>
    %cst_56 = arith.constant 0.000000e+00 : f32
    %212 = arith.subf %cst_56, %25 : f32
    %213 = vector.broadcast %212 : f32 to vector<8x8xf32>
    %214 = arith.maximumf %213, %211 : vector<8x8xf32>
    %215 = vector.broadcast %25 : f32 to vector<8x8xf32>
    %216 = arith.minimumf %215, %214 : vector<8x8xf32>
    %217 = arith.subf %211, %216 : vector<8x8xf32>
    %218 = arith.subf %9, %217 : vector<8x8xf32>
    %219 = vector.broadcast %24 : f32 to vector<8x8xf32>
    %220 = arith.mulf %207, %219 : vector<8x8xf32>
    %221 = arith.subf %218, %220 : vector<8x8xf32>
    %222 = arith.truncf %221 : vector<8x8xf32> to vector<8x8xbf16>
    %cst_57 = arith.constant dense<0.000000e+00> : vector<8x8xf32>
    %223 = tpu.matmul %222, %222, %cst_57 {dimension_numbers = #tpu.dot_dimension_numbers<[1], [1], [0], [0], [0, 0, 1, 0], [], []>} : vector<8x8xbf16>, vector<8x8xbf16>, vector<8x8xf32> -> vector<8x8xf32>
    %cst_58 = arith.constant 0.353553385 : f32
    %224 = vector.broadcast %cst_58 : f32 to vector<8x8xf32>
    %225 = arith.mulf %223, %224 : vector<8x8xf32>
    %cst_59 = arith.constant dense<0xFF800000> : vector<8xf32>
    %226 = vector.multi_reduction <maximumf>, %225, %cst_59 [1] : vector<8x8xf32> to vector<8xf32>
    %cst_60 = arith.constant 0xFF800000 : f32
    %227 = vector.broadcast %cst_60 : f32 to vector<8xf32>
    %228 = arith.maximumf %227, %226 : vector<8xf32>
    %229 = vector.shape_cast %228 : vector<8xf32> to vector<8x1xf32>
    %230 = vector.broadcast %229 : vector<8x1xf32> to vector<8x8xf32>
    %231 = arith.subf %225, %230 : vector<8x8xf32>
    %232 = math.exp %231 : vector<8x8xf32>
    %cst_61 = arith.constant dense<0.000000e+00> : vector<8xf32>
    %233 = vector.multi_reduction <add>, %232, %cst_61 [1] : vector<8x8xf32> to vector<8xf32>
    %234 = vector.shape_cast %233 : vector<8xf32> to vector<8x1xf32>
    %235 = vector.broadcast %234 : vector<8x1xf32> to vector<8x8xf32>
    %236 = arith.divf %232, %235 : vector<8x8xf32>
    %237 = arith.truncf %236 : vector<8x8xf32> to vector<8x8xbf16>
    %cst_62 = arith.constant dense<0.000000e+00> : vector<8x8xf32>
    %238 = tpu.matmul %237, %17, %cst_62 {dimension_numbers = #tpu.dot_dimension_numbers<[1], [0], [0], [1], [0, 0, 1, 1], [], []>} : vector<8x8xbf16>, vector<8x8xbf16>, vector<8x8xf32> -> vector<8x8xf32>
    %c0_63 = arith.constant 0 : index
    %c0_64 = arith.constant 0 : index
    %c0_65 = arith.constant 0 : index
    %c0_66 = arith.constant 0 : index
    %239 = vector.load %arg10[%c0_63, %c0_64, %c0_65, %c0_66] : memref<1x1x8x8xf32, #tpu.memory_space<vmem>>, vector<1x1x8x8xf32>
    %240 = vector.shape_cast %239 : vector<1x1x8x8xf32> to vector<8x8xf32>
    %241 = vector.shape_cast %236 : vector<8x8xf32> to vector<1x1x8x8xf32>
    tpu.vector_store %arg10[%c0_63, %c0_64, %c0_65, %c0_66], %241 {strides = array<i32>} : memref<1x1x8x8xf32, #tpu.memory_space<vmem>>, vector<1x1x8x8xf32>,
    %c0_i32 = arith.constant 0 : i32
    %242 = arith.cmpi eq, %arg1, %c0_i32 : i32
    %243 = arith.extui %242 : i1 to i32
    %c0_i32_67 = arith.constant 0 : i32
    %244 = arith.cmpi ne, %243, %c0_i32_67 : i32
    scf.if %244 {
      %cst_77 = arith.constant 0.000000e+00 : f32
      %255 = vector.broadcast %cst_77 : f32 to vector<8x32xf32>
      %c0_78 = arith.constant 0 : index
      %c0_79 = arith.constant 0 : index
      %256 = vector.load %arg11[%c0_78, %c0_79] : memref<8x32xf32, #tpu.memory_space<vmem>>, vector<8x32xf32>
      tpu.vector_store %arg11[%c0_78, %c0_79], %255 {strides = array<i32>} : memref<8x32xf32, #tpu.memory_space<vmem>>, vector<8x32xf32>,
    } else {
    }
    %c0_68 = arith.constant 0 : index
    %c0_69 = arith.constant 0 : index
    %245 = vector.load %arg11[%c0_68, %c0_69] : memref<8x32xf32, #tpu.memory_space<vmem>>, vector<8x32xf32>
    %246 = arith.truncf %238 : vector<8x8xf32> to vector<8x8xbf16>
    %c0_70 = arith.constant 0 : index
    %c0_71 = arith.constant 0 : index
    %c0_72 = arith.constant 0 : index
    %247 = vector.load %arg7[%c0_70, %c0_71, %c0_72] : memref<1x8x32xbf16, #tpu.memory_space<vmem>>, vector<1x8x32xbf16>
    %248 = vector.shape_cast %247 : vector<1x8x32xbf16> to vector<8x32xbf16>
    %cst_73 = arith.constant dense<0.000000e+00> : vector<8x32xf32>
    %249 = tpu.matmul %246, %248, %cst_73 {dimension_numbers = #tpu.dot_dimension_numbers<[1], [0], [0], [1], [0, 0, 1, 1], [], []>} : vector<8x8xbf16>, vector<8x32xbf16>, vector<8x32xf32> -> vector<8x32xf32>
    %250 = arith.addf %245, %249 : vector<8x32xf32>
    %c0_74 = arith.constant 0 : index
    %c0_75 = arith.constant 0 : index
    %251 = vector.load %arg11[%c0_74, %c0_75] : memref<8x32xf32, #tpu.memory_space<vmem>>, vector<8x32xf32>
    tpu.vector_store %arg11[%c0_74, %c0_75], %250 {strides = array<i32>} : memref<8x32xf32, #tpu.memory_space<vmem>>, vector<8x32xf32>,
    %c3_i32 = arith.constant 3 : i32
    %252 = arith.cmpi eq, %arg1, %c3_i32 : i32
    %253 = arith.extui %252 : i1 to i32
    %c0_i32_76 = arith.constant 0 : i32
    %254 = arith.cmpi ne, %253, %c0_i32_76 : i32
    scf.if %254 {
      %c0_77 = arith.constant 0 : index
      %c0_78 = arith.constant 0 : index
      %255 = vector.load %arg11[%c0_77, %c0_78] : memref<8x32xf32, #tpu.memory_space<vmem>>, vector<8x32xf32>
      %c0_79 = arith.constant 0 : index
      %c0_80 = arith.constant 0 : index
      %256 = vector.load %arg8[%c0_79, %c0_80] : memref<1x32xf32, #tpu.memory_space<vmem>>, vector<1x32xf32>
      %257 = vector.broadcast %256 : vector<1x32xf32> to vector<8x32xf32>
      %258 = arith.addf %255, %257 : vector<8x32xf32>
      %c0_81 = arith.constant 0 : index
      %c0_82 = arith.constant 0 : index
      %c0_83 = arith.constant 0 : index
      %259 = vector.load %arg9[%c0_81, %c0_82, %c0_83] : memref<1x8x32xf32, #tpu.memory_space<vmem>>, vector<1x8x32xf32>
      %260 = vector.shape_cast %259 : vector<1x8x32xf32> to vector<8x32xf32>
      %261 = vector.shape_cast %258 : vector<8x32xf32> to vector<1x8x32xf32>
      tpu.vector_store %arg9[%c0_81, %c0_82, %c0_83], %261 {strides = array<i32>} : memref<1x8x32xf32, #tpu.memory_space<vmem>>, vector<1x8x32xf32>,
    } else {
    }
    return
  }
  func.func @transform_0(%arg0: i32, %arg1: i32) -> (i32, i32, i32) {
    %c0_i32 = arith.constant 0 : i32
    %c0_i32_0 = arith.constant 0 : i32
    %c0_i32_1 = arith.constant 0 : i32
    return %arg0, %c0_i32, %c0_i32_0 : i32, i32, i32
  }
  func.func @transform_1(%arg0: i32, %arg1: i32) -> (i32, i32, i32) {
    %c0_i32 = arith.constant 0 : i32
    %c0_i32_0 = arith.constant 0 : i32
    %c0_i32_1 = arith.constant 0 : i32
    return %arg1, %c0_i32, %c0_i32_0 : i32, i32, i32
  }
  func.func @transform_2(%arg0: i32, %arg1: i32) -> (i32, i32, i32) {
    %c0_i32 = arith.constant 0 : i32
    %c0_i32_0 = arith.constant 0 : i32
    %c0_i32_1 = arith.constant 0 : i32
    return %arg1, %c0_i32, %c0_i32_0 : i32, i32, i32
  }
  func.func @transform_3(%arg0: i32, %arg1: i32) -> (i32, i32, i32) {
    %c0_i32 = arith.constant 0 : i32
    %c0_i32_0 = arith.constant 0 : i32
    %c0_i32_1 = arith.constant 0 : i32
    return %arg1, %c0_i32, %c0_i32_0 : i32, i32, i32
  }
  func.func @transform_4(%arg0: i32, %arg1: i32) -> (i32, i32, i32) {
    %c0_i32 = arith.constant 0 : i32
    %c0_i32_0 = arith.constant 0 : i32
    %c0_i32_1 = arith.constant 0 : i32
    return %arg1, %c0_i32, %c0_i32_0 : i32, i32, i32
  }
  func.func @transform_5(%arg0: i32, %arg1: i32) -> (i32, i32, i32) {
    %c0_i32 = arith.constant 0 : i32
    %c0_i32_0 = arith.constant 0 : i32
    %c0_i32_1 = arith.constant 0 : i32
    return %arg1, %c0_i32, %c0_i32_0 : i32, i32, i32
  }
  func.func @transform_6(%arg0: i32, %arg1: i32) -> (i32, i32) {
    %c0_i32 = arith.constant 0 : i32
    %c0_i32_0 = arith.constant 0 : i32
    %c0_i32_1 = arith.constant 0 : i32
    return %c0_i32, %c0_i32_0 : i32, i32
  }
  func.func @transform_7(%arg0: i32, %arg1: i32) -> (i32, i32, i32) {
    %c0_i32 = arith.constant 0 : i32
    %c0_i32_0 = arith.constant 0 : i32
    %c0_i32_1 = arith.constant 0 : i32
    return %arg0, %c0_i32, %c0_i32_0 : i32, i32, i32
  }
  func.func @transform_8(%arg0: i32, %arg1: i32) -> (i32, i32, i32, i32) {
    %c0_i32 = arith.constant 0 : i32
    %c0_i32_0 = arith.constant 0 : i32
    %c0_i32_1 = arith.constant 0 : i32
    return %arg0, %arg1, %c0_i32, %c0_i32_0 : i32, i32, i32, i32
  }
}

</mosaic_0001>

<bundles_post_ra>
// kernel: tpu_custom_call.1
= control target key start
LH: loop header
LB: loop body
LE: loop exit
PB: predicated region body
PF: predicated region fallthrough
CT: control target
= control target key end

     0   :  { %s2424_s0 = inlined_call_operand.vmem [shape: f32[2,8,32], index: 0, kind: input, shape index: {}]   ;;  %s2425_s1 = inlined_call_operand.vmem [shape: bf16[4,32,8], index: 1, kind: input, shape index: {}]   ;;  %s2426_s2 = inlined_call_operand.vmem [shape: f32[4,1,8], index: 2, kind: input, shape index: {}]   ;;  %s2427_s3 = inlined_call_operand.vmem [shape: bf16[4,32,8], index: 3, kind: input, shape index: {}]   ;;  %s2428_s4 = inlined_call_operand.vmem [shape: f32[4,1,8], index: 4, kind: input, shape index: {}]   ;;  %s2429_s5 = inlined_call_operand.vmem [shape: bf16[4,8,32], index: 5, kind: input, shape index: {}]   ;;  %s2430_s6 = inlined_call_operand.vmem [shape: f32[1,32], index: 6, kind: input, shape index: {}]   ;;  %s2431_s7 = inlined_call_operand.hbm [shape: f32[2,8,32], index: 7, kind: output, shape index: {0}]   ;;  %s2432_s8 = inlined_call_operand.hbm [shape: f32[2,4,8,8], index: 8, kind: output, shape index: {1}]  }
   0x1   :  { %2445 = sst [smem:[#allocation20_spill]] %s2432_s8 }
   0x2   :  { %14 = vsyncpa [#allocation4], 0 }
   0x3   :  { %16 = vsyncpa [#allocation4 + $0x1], 0 }
   0x4   :  { %17 = vsyncpa [#allocation6], 0 }
   0x5   :  { %19 = vsyncpa [#allocation6 + $0x1], 0  ;;  %s2014_s27 = smov 0   ;;  %s2016_s28 = smov 0  }
   0x6   :  { %s2018_s29 = smov 0   ;;  %s2020_s30 = smov 0  }
   0x7   :  { %s2022_s9 = smov 0   ;;  %s2024_s10 = smov 0  }
   0x8   :  { %s2026_s11 = smov 0   ;;  %s2028_s12 = smov 0  }
   0x9   :  { %s2030_s13 = smov 0   ;;  %s2032_s14 = smov 0  }
   0xa   :  { %s2034_s15 = smov 0  }
   0xb LB: > { %2446 = sst [smem:[#allocation9_spill]] %s1922_s27  ;;  %s1499_s16 = sadd.s32 4294967295, %s1962_s15   ;;  %s1962_s15 = sphi %s2034_s15, %s25_s15   ;;  %s1958_s14 = sphi %s2032_s14, %s2477_s14   ;;  %s1954_s13 = sphi %s2030_s13, %s2476_s13   ;;  %s1950_s12 = sphi %s2028_s12, %s2475_s12   ;;  %s1946_s11 = sphi %s2026_s11, %s2474_s11   ;;  %s1942_s10 = sphi %s2024_s10, %s2473_s10   ;;  %s1938_s9 = sphi %s2022_s9, %s2481_s9   ;;  %s1934_s30 = sphi %s2020_s30, %s2480_s30   ;;  %s1930_s29 = sphi %s2018_s29, %s2471_s29   ;;  %s1926_s28 = sphi %s2016_s28, %s2479_s28   ;;  %s1922_s27 = sphi %s2014_s27, %s2478_s27  }
   0xc   : > { %2447 = sst [smem:[#allocation10_spill]] %s1930_s29  ;;  %s1500_s17 = sadd.s32 4294967294, %s1962_s15  }
   0xd   : > { %2448 = sst [smem:[#allocation11_spill]] %s1934_s30  ;;  %s34_s18 = sadd.s32 1, %s1954_s13 }
   0xe   : > { %2449 = sst [smem:[#allocation12_spill]] %s1942_s10  ;;  %s37_s19 = sadd.s32 1, %s1958_s14 }
   0xf   : > { %2450 = sst [smem:[#allocation13_spill]] %s1954_s13  ;;  %p35_p0 = scmp.ge.s32.totalorder %s34_s18, 4 }
  0x10   : > { %2451 = sst [smem:[#allocation14_spill]] %s1958_s14  ;;  %s221_s20 = sadd.s32 1, %s1942_s10 }
  0x11   : > { %p231_p1 = scmp.ne.s32.totalorder %s1942_s10, %s1938_s9  ;;  %p2076_p2 = scmp.eq.s32.totalorder %s1499_s16, 7 }
  0x12   : > { %s2483_s18 = smov (%p35_p0, %s34_s18), 0  ;;  %s2485_s19 = smov (!%p35_p0, %s37_s19), %s1958_s14 }
  0x13   : > { %2453 = sst [smem:[#allocation15_spill]] %s2483_s18  ;;  %p2085_p3 = por %p2076_p2, %p231_p1 }
  0x14   : > { %p237_p4 = scmp.ne.s32.totalorder %s1938_s9, %s1934_s30  ;;  %p39_p5 = scmp.ge.s32.totalorder %s2485_s19, 2 }
  0x15   : > { %p2091_p6 = scmp.eq.s32.totalorder %s1500_s17, 7  ;;  %s245_s24 = ssub.s32 %s1954_s13, %s2483_s18 }
  0x16   : > { %s249_s25 = sadd.s32 1, %s1930_s29  ;;  %s2487_s19 = smov (%p39_p5, %s2485_s19), 0 }
  0x17   : > { %2456 = sst [smem:[#allocation16_spill]] %s2487_s19  ;;  %p2102_p7 = por %p2091_p6, %p237_p4 }
  0x18   : > { %p259_p8 = scmp.ne.s32.totalorder %s1930_s29, %s1926_s28  ;;  %s218_s16 = ssub.s32 %s1958_s14, %s2487_s19 }
  0x19   : > { %p265_p9 = scmp.ne.s32.totalorder %s1926_s28, %s1922_s27  ;;  %p219_p10 = scmp.eq.s32.totalorder %s218_s16, 0 }
  0x1a   : > { %s246_s17 = sor.u32 %s245_s24, %s218_s16  ;;  %p2114_p12 = por %p259_p8, %p2076_p2 }
  0x1b   : > { %p247_p11 = scmp.eq.s32.totalorder %s246_s17, 0  ;;  %p2126_p13 = por %p265_p9, %p2091_p6 }
  0x1c   : > { %s2119_s18 = scalar_select %p219_p10, %s1942_s10, %s221_s20  }
  0x1d   : > { %s2122_s13 = scalar_select %p247_p11, %s1930_s29, %s249_s25  }
  0x1e   : > { %2459 = sst [smem:[#allocation17_spill]] %s2119_s18  ;;  %p1503_p0 = scmp.ge.s32.totalorder %s1962_s15, 1 }
  0x1f   : > { %2460 = sst [smem:[#allocation18_spill]] %s2122_s13  ;;  %p329_p1 = scmp.lt.s32.totalorder %s1962_s15, 9 }
  0x20   : > { %s2461_s8 = scalar_select %p2126_p13, 1, 0 }
  0x21   : > { %p330_p4 = pnand %p1503_p0, %p329_p1 }
  0x22   : > { %2462 = sst [smem:[#allocation19_spill]] %s2461_s8  ;;  %s2437_s21 = sand.u32 (!%p330_p4), 1, %s1938_s9   ;;  %v1964_v0 = vmov (!%p330_p4), 0.0   ;;  %vm1965_vm0 = vmmov (!%p330_p4), 0   ;;  %vm437_vm1 = vcmask (!%p330_p4), 261120   ;;  %vm546_vm2 = vcmask (!%p330_p4), 64512  }
  0x23   : > { %333 = sbr.rel (%p330_p4) target bundleno = 5521 (0x1591), region = 48  ;;  %p391_p2 = scmp.lt.s32.totalorder (!%p330_p4), %s1946_s11, 3  ;;  %1577 = vmatprep.subr.bf16.mxu0 (!%p330_p4), %v1964_v0  ;;  %1581 = vmatprep.mubr.msk.bf16.mxu0 (!%p330_p4), %vm1965_vm0, %v1964_v0  ;;  %vm636_vm3 = vcmask (!%p330_p4), 1043456  }
  0x24   : > { %s2136_s20 = sshll.u32 (!%p330_p4), %s2437_s21, 3  ;;  %p387_p5 = scmp.lt.s32.totalorder (!%p330_p4), %s1950_s12, 1  ;;  %1585 = vmatprep.subr.bf16.mxu1 (!%p330_p4), %v1964_v0  ;;  %1589 = vmatprep.mubr.msk.bf16.mxu1 (!%p330_p4), %vm1965_vm0, %v1964_v0 }
  0x25   : > { %p1532_p6 = scmp.ne.s32.totalorder (!%p330_p4), %s1946_s11, 0 }
  0x2a   : > { %s2146_s23 = scalar_select %p391_p2, %s1946_s11, 3 }
  0x2b   : > { %s388_s24 = scalar_select %p387_p5, %s1950_s12, 1 }
  0x2c   : > { %s1543_s25 = sshll.u32 %s2146_s23, 4  ;;  %s1511_s16 = sshll.u32 %s2146_s23, 2 }
  0x2d   : > { %s395_s19 = scalar_lea.vmem %s2425_s1, %s1543_s25  ;;  %s2159_s10 = scalar_lea.vmem %s2429_s5, %s1511_s16 }
  0x2e   : > { %v1780_v1 = vld [vmem:[%s395_s19] sm:$0xff]   ;;  %s1506_s13 = sshll.u32 %s388_s24, 3  ;;  %v1781_v2 = vld [vmem:[%s395_s19 + $0x8] sm:$0xff]   ;;  %s398_s8 = scalar_lea.vmem %s2426_s2, %s2146_s23 }
  0x2f   : > { %s390_s27 = scalar_lea.vmem %s2424_s0, %s1506_s13  ;;  %1578 = vmatpush3.bf16.msra.mxu0 %v1780_v1  ;;  %v1512_v5 = vld [vmem:[%s398_s8] ss:$0 sm:$0xff]  ;;  %s403_s14 = scalar_lea.vmem %s2427_s3, %s1543_s25 }
  0x30   : > { %v412_v3 = vld [vmem:[%s390_s27] sm:$0xff]  ;;  %1579 = vmatprep.subr.bf16.mxu0 %v1964_v0  ;;  %v1783_v37 = vld [vmem:[%s403_s14 + $0x8] sm:$0xff]   ;;  %s406_s8 = scalar_lea.vmem %s2428_s4, %s2146_s23  ;;  %s2444_s23 = sand.u32 1, %s1926_s28  }
  0x31   : > { %v413_v4 = vpack.c.bf16 %v412_v3, %v412_v3  ;;  %v1782_v36 = vld [vmem:[%s403_s14] sm:$0xff]  }
  0x32   : > { %1586 = vmatpush3.bf16.msra.mxu1 %v1782_v36  ;;  %v1516_v44 = vld [vmem:[%s406_s8] ss:$0 sm:$0xff] }
  0x33   : > { %1580 = vmatpush3.bf16.msra.mxu0 %v1781_v2  ;;  %1587 = vmatprep.subr.bf16.mxu1 %v1964_v0 }
  0x34   : > { %1593 = vmatprep.subr.bf16.mxu0 %v1964_v0 }
  0x36   : > { %1582 = vmatmul.mubr.msk.bf16.vlgmr.msra.gmra.mrb[0].mxu0 %vm437_vm1, %v413_v4  ;;  %1588 = vmatpush3.bf16.msra.mxu1 %v1783_v37 }
  0x37   : > { %1595 = vmatprep.mubr.msk.bf16.mxu0 %vm1965_vm0, %v1964_v0  ;;  %1599 = vmatprep.subr.bf16.mxu1 %v1964_v0 }
  0x39   : > { %1590 = vmatmul.mubr.msk.bf16.vlgmr.msra.gmra.mrb[0].mxu1 %vm437_vm1, %v413_v4 }
  0x3a   : > { %1601 = vmatprep.mubr.msk.bf16.mxu1 %vm1965_vm0, %v1964_v0 }
 0x109   : > { %v475_v6 = vpop.f32.mrb[0].mxu0 }
 0x10a   : > { %v2173_v7 = vadd.f32 %v1512_v5, %v475_v6  ;;  %v1583_v8 = vpop.f32.mrb[1].mxu0 }
 0x10b   : > { %v478_v9 = vpop.f32.mrb[2].mxu0 }
 0x10c   : > { %v1584_v10 = vpop.f32.mrb[3].mxu0  ;;  %v545_v11 = vand.u32 2147483647, %v2173_v7  ;;  %v538_v45 = vpop.f32.mrb[0].mxu1 }
 0x10d   : > { %v539_v46 = vadd.f32 %v1516_v44, %v538_v45  ;;  %v1591_v47 = vpop.f32.mrb[1].mxu1 }
 0x10e   : > { %v547_v12 = vsel %vm546_vm2, %v545_v11, 0.0  ;;  %v541_v48 = vpop.f32.mrb[2].mxu1 }
 0x10f   : > { %548 = vadd.xlane.f32.xlu0 %v547_v12  ;;  %v544_v49 = vpack.c.bf16 %v539_v46, %v539_v46  ;;  %v1592_v50 = vpop.f32.mrb[3].mxu1 }
 0x111   : > { %v2212_v51 = vsel %vm636_vm3, %v544_v49, 0 }
 0x112   : > { %1600 = vmatpush3.bf16.msra.mxu1 %v2212_v51 }
 0x113   : > { %1611 = vmatprep.subr.bf16.mxu1 %v1964_v0 }
 0x19c   : > { %v549_v13 = vpop.xlane.xlu0 %548 }
 0x19d   : > { %v550_v14 = vrot.slane %v549_v13, 4 }
 0x19f   : > { %v551_v15 = vadd.f32 %v550_v14, %v549_v13 }
 0x1a1   : > { %v552_v16 = vrot.slane %v551_v15, 2 }
 0x1a3   : > { %v553_v17 = vadd.f32 %v552_v16, %v551_v15 }
 0x1a5   : > { %v554_v18 = vrot.slane %v553_v17, 1 }
 0x1a7   : > { %v555_v19 = vadd.f32 %v554_v18, %v553_v17 }
 0x1a9   : > { %1671 = vpush %v555_v19 }
 0x1da   : > { %s1672_s27 = spop %1671 }
 0x1db   : > { %v557_v20 = vstv %s1672_s27  ;;  %s2306_s27 = sshll.u32 %s2444_s23, 3 }
 0x1dc   : > { %1784 = vrcp.f32 %v557_v20 }
 0x1e6   : > { %v1785_v21 = vpop.eup %1784 }
 0x1e7   : > { %1673 = vpush %v1785_v21 }
 0x218   : > { %s1674_s29 = spop %1673 }
 0x219   : > { %s560_s13 = smul.f32 64.0, %s1674_s29  ;;  %s386_s29 = scalar_lea.vmem [#allocation5], %s2306_s27 }
 0x21b   : > { %v2177_v22 = vstv %s560_s13  ;;  %s564_s19 = smul.f32 4.0, %s560_s13  ;;  %s379_s13 = scalar_lea.vmem [#allocation3], %s2136_s20 }
 0x21c   : > { %1786 = vrcp.f32 %v2177_v22 }
 0x21d   : > { %s568_s24 = ssub.f32 0.0, %s564_s19  ;;  %v2187_v29 = vstv %s564_s19 }
 0x21f   : > { %v2184_v27 = vstv %s568_s24 }
 0x226   : > { %v1787_v23 = vpop.eup %1786 }
 0x227   : > { %1675 = vpush %v1787_v23 }
 0x258   : > { %s1676_s21 = spop %1675 }
 0x259   : > { %v2180_v24 = vstv %s1676_s21 }
 0x25a   : > { %v566_v25 = vmul.f32 0.0, %v2180_v24 }
 0x25c   : > { %v567_v26 = vadd.f32 %v566_v25, %v2173_v7 }
 0x25e   : > { %v570_v28 = vmax.f32 %v2184_v27, %v567_v26 }
 0x260   : > { %v572_v30 = vmin.f32 %v2187_v29, %v570_v28 }
 0x262   : > { %v573_v31 = vsub.f32 %v567_v26, %v572_v30 }
 0x264   : > { %v574_v32 = vsub.f32 %v2173_v7, %v573_v31 }
 0x266   : > { %v575_v33 = vsub.f32 %v574_v32, %v566_v25 }
 0x268   : > { %v576_v34 = vpack.c.bf16 %v575_v33, %v575_v33 }
 0x26a   : > { %v578_v35 = vsel %vm546_vm2, %v576_v34, 0 }
 0x26b   : > { %1594 = vmatpush3.bf16.xpose.msra.mxu0 %v578_v35 }
 0x26c   : > { %1605 = vmatprep.subr.bf16.mxu0 %v1964_v0 }
 0x272   : > { %1596 = vmatmul.mubr.msk.bf16.vlgmr.msra.gmra.mrb[4].mxu0 %vm546_vm2, %v576_v34 }
 0x273   : > { %1607 = vmatprep.mubr.msk.bf16.mxu0 %vm1965_vm0, %v1964_v0 }
 0x345   : > { %v614_v38 = vpop.f32.mrb[4].mxu0 }
 0x346   : > { %v620_v39 = vmul.f32 0.35355338, %v614_v38  ;;  %v1597_v40 = vpop.f32.mrb[5].mxu0 }
 0x347   : > { %v617_v41 = vpop.f32.mrb[6].mxu0 }
 0x348   : > { %v1598_v42 = vpop.f32.mrb[7].mxu0  ;;  %v621_v43 = vsel %vm546_vm2, %v620_v39, -inf }
 0x349   : > { %622 = vmax.xlane.f32.xlu0 %v621_v43 }
 0x3d6   : > { %v623_v52 = vpop.xlane.xlu0 %622 }
 0x3d7   : > { %v624_v53 = vsub.f32 %v620_v39, %v623_v52 }
 0x3d9   : > { %v625_v54 = vmul.f32 1.442695, %v624_v53 }
 0x3db   : > { %1788 = vpow2.f32 %v625_v54 }
 0x3e5   : > { %v1789_v55 = vpop.eup %1788 }
 0x3e6   : > { %v627_v56 = vsel %vm546_vm2, %v1789_v55, 0.0 }
 0x3e7   : > { %628 = vadd.xlane.f32.xlu1 %v627_v56 }
 0x474   : > { %v629_v57 = vpop.xlane.xlu1 %628 }
 0x475   : > { %1790 = vrcp.f32 %v629_v57 }
 0x47f   : > { %v1791_v58 = vpop.eup %1790 }
 0x480   : > { %v631_v59 = vmul.f32 %v1791_v58, %v1789_v55 }
 0x482   : > { %v632_v60 = vpack.c.bf16 %v631_v59, %v631_v59 }
 0x484   : > { %1602 = vmatmul.mubr.msk.bf16.vlgmr.msra.gmra.mrb[4].mxu1 %vm546_vm2, %v632_v60 }
 0x485   : > { %1612 = vmatpush3.bf16.msra.mxu1 %v2212_v51  ;;  %1613 = vmatprep.mubr.msk.bf16.mxu1 %vm1965_vm0, %v1964_v0 }
 0x486   : > { %1623 = vmatprep.subr.bf16.mxu1 %v1964_v0 }
 0x557   : > { %v674_v61 = vpop.f32.mrb[4].mxu1 }
 0x558   : > { %v680_v62 = vsub.f32 %v2173_v7, %v674_v61  ;;  %v1603_v63 = vpop.f32.mrb[5].mxu1 }
 0x559   : > { %v677_v1 = vpop.f32.mrb[6].mxu1 }
 0x55a   : > { %v681_v2 = vsub.f32 %v680_v62, %v573_v31  ;;  %v1604_v3 = vpop.f32.mrb[7].mxu1 }
 0x55c   : > { %v683_v4 = vmul.f32 %v681_v2, %v2177_v22 }
 0x55e   : > { %v685_v5 = vmul.f32 %v683_v4, %v2180_v24 }
 0x560   : > { %v686_v6 = vadd.f32 %v685_v5, %v680_v62 }
 0x562   : > { %v687_v8 = vmax.f32 %v2184_v27, %v686_v6 }
 0x564   : > { %v688_v9 = vmin.f32 %v2187_v29, %v687_v8 }
 0x566   : > { %v689_v10 = vsub.f32 %v686_v6, %v688_v9 }
 0x568   : > { %v690_v11 = vsub.f32 %v2173_v7, %v689_v10 }
 0x56a   : > { %v691_v12 = vsub.f32 %v690_v11, %v685_v5 }
 0x56c   : > { %v692_v13 = vpack.c.bf16 %v691_v12, %v691_v12 }
 0x56e   : > { %v694_v14 = vsel %vm546_vm2, %v692_v13, 0 }
 0x56f   : > { %1606 = vmatpush3.bf16.xpose.msra.mxu0 %v694_v14 }
 0x570   : > { %1617 = vmatprep.subr.bf16.mxu0 %v1964_v0 }
 0x576   : > { %1608 = vmatmul.mubr.msk.bf16.vlgmr.msra.gmra.mrb[8].mxu0 %vm546_vm2, %v692_v13 }
 0x577   : > { %1619 = vmatprep.mubr.msk.bf16.mxu0 %vm1965_vm0, %v1964_v0 }
 0x649   : > { %v730_v15 = vpop.f32.mrb[8].mxu0 }
 0x64a   : > { %v736_v16 = vmul.f32 0.35355338, %v730_v15  ;;  %v1609_v17 = vpop.f32.mrb[9].mxu0 }
 0x64b   : > { %v733_v18 = vpop.f32.mrb[10].mxu0 }
 0x64c   : > { %v1610_v19 = vpop.f32.mrb[11].mxu0  ;;  %v737_v20 = vsel %vm546_vm2, %v736_v16, -inf }
 0x64d   : > { %738 = vmax.xlane.f32.xlu1 %v737_v20 }
 0x6da   : > { %v739_v21 = vpop.xlane.xlu1 %738 }
 0x6db   : > { %v740_v23 = vsub.f32 %v736_v16, %v739_v21 }
 0x6dd   : > { %v741_v25 = vmul.f32 1.442695, %v740_v23 }
 0x6df   : > { %1792 = vpow2.f32 %v741_v25 }
 0x6e9   : > { %v1793_v26 = vpop.eup %1792 }
 0x6ea   : > { %v743_v28 = vsel %vm546_vm2, %v1793_v26, 0.0 }
 0x6eb   : > { %744 = vadd.xlane.f32.xlu0 %v743_v28 }
 0x778   : > { %v745_v30 = vpop.xlane.xlu0 %744 }
 0x779   : > { %1794 = vrcp.f32 %v745_v30 }
 0x783   : > { %v1795_v31 = vpop.eup %1794 }
 0x784   : > { %v747_v32 = vmul.f32 %v1795_v31, %v1793_v26 }
 0x786   : > { %v748_v33 = vpack.c.bf16 %v747_v32, %v747_v32 }
 0x788   : > { %1614 = vmatmul.mubr.msk.bf16.vlgmr.msra.gmra.mrb[8].mxu1 %vm546_vm2, %v748_v33 }
 0x789   : > { %1624 = vmatpush3.bf16.msra.mxu1 %v2212_v51  ;;  %1625 = vmatprep.mubr.msk.bf16.mxu1 %vm1965_vm0, %v1964_v0 }
 0x78a   : > { %1635 = vmatprep.subr.bf16.mxu1 %v1964_v0 }
 0x85b   : > { %v786_v34 = vpop.f32.mrb[8].mxu1 }
 0x85c   : > { %v792_v35 = vsub.f32 %v2173_v7, %v786_v34  ;;  %v1615_v36 = vpop.f32.mrb[9].mxu1 }
 0x85d   : > { %v789_v37 = vpop.f32.mrb[10].mxu1 }
 0x85e   : > { %v793_v38 = vsub.f32 %v792_v35, %v689_v10  ;;  %v1616_v39 = vpop.f32.mrb[11].mxu1 }
 0x860   : > { %v794_v40 = vmul.f32 %v793_v38, %v2177_v22 }
 0x862   : > { %v795_v41 = vadd.f32 %v794_v40, %v683_v4 }
 0x864   : > { %v796_v42 = vmul.f32 %v795_v41, %v2180_v24 }
 0x866   : > { %v797_v43 = vadd.f32 %v796_v42, %v792_v35 }
 0x868   : > { %v798_v44 = vmax.f32 %v2184_v27, %v797_v43 }
 0x86a   : > { %v799_v45 = vmin.f32 %v2187_v29, %v798_v44 }
 0x86c   : > { %v800_v46 = vsub.f32 %v797_v43, %v799_v45 }
 0x86e   : > { %v801_v47 = vsub.f32 %v2173_v7, %v800_v46 }
 0x870   : > { %v802_v48 = vsub.f32 %v801_v47, %v796_v42 }
 0x872   : > { %v803_v49 = vpack.c.bf16 %v802_v48, %v802_v48 }
 0x874   : > { %v805_v50 = vsel %vm546_vm2, %v803_v49, 0 }
 0x875   : > { %1618 = vmatpush3.bf16.xpose.msra.mxu0 %v805_v50 }
 0x876   : > { %1629 = vmatprep.subr.bf16.mxu0 %v1964_v0 }
 0x87c   : > { %1620 = vmatmul.mubr.msk.bf16.vlgmr.msra.gmra.mrb[12].mxu0 %vm546_vm2, %v803_v49 }
 0x87d   : > { %1631 = vmatprep.mubr.msk.bf16.mxu0 %vm1965_vm0, %v1964_v0 }
 0x94f   : > { %v841_v52 = vpop.f32.mrb[12].mxu0 }
 0x950   : > { %v847_v53 = vmul.f32 0.35355338, %v841_v52  ;;  %v1621_v54 = vpop.f32.mrb[13].mxu0 }
 0x951   : > { %v844_v55 = vpop.f32.mrb[14].mxu0 }
 0x952   : > { %v1622_v56 = vpop.f32.mrb[15].mxu0  ;;  %v848_v57 = vsel %vm546_vm2, %v847_v53, -inf }
 0x953   : > { %849 = vmax.xlane.f32.xlu1 %v848_v57 }
 0x9e0   : > { %v850_v58 = vpop.xlane.xlu1 %849 }
 0x9e1   : > { %v851_v59 = vsub.f32 %v847_v53, %v850_v58 }
 0x9e3   : > { %v852_v60 = vmul.f32 1.442695, %v851_v59 }
 0x9e5   : > { %1796 = vpow2.f32 %v852_v60 }
 0x9ef   : > { %v1797_v61 = vpop.eup %1796 }
 0x9f0   : > { %v854_v62 = vsel %vm546_vm2, %v1797_v61, 0.0 }
 0x9f1   : > { %855 = vadd.xlane.f32.xlu0 %v854_v62 }
 0xa7e   : > { %v856_v63 = vpop.xlane.xlu0 %855 }
 0xa7f   : > { %1798 = vrcp.f32 %v856_v63 }
 0xa89   : > { %v1799_v1 = vpop.eup %1798 }
 0xa8a   : > { %v858_v2 = vmul.f32 %v1799_v1, %v1797_v61 }
 0xa8c   : > { %v859_v3 = vpack.c.bf16 %v858_v2, %v858_v2 }
 0xa8e   : > { %1626 = vmatmul.mubr.msk.bf16.vlgmr.msra.gmra.mrb[12].mxu1 %vm546_vm2, %v859_v3 }
 0xa8f   : > { %1636 = vmatpush3.bf16.msra.mxu1 %v2212_v51  ;;  %1637 = vmatprep.mubr.msk.bf16.mxu1 %vm1965_vm0, %v1964_v0 }
 0xa90   : > { %1647 = vmatprep.subr.bf16.mxu1 %v1964_v0 }
 0xb61   : > { %v897_v4 = vpop.f32.mrb[12].mxu1 }
 0xb62   : > { %v903_v5 = vsub.f32 %v2173_v7, %v897_v4  ;;  %v1627_v6 = vpop.f32.mrb[13].mxu1 }
 0xb63   : > { %v900_v8 = vpop.f32.mrb[14].mxu1 }
 0xb64   : > { %v904_v9 = vsub.f32 %v903_v5, %v800_v46  ;;  %v1628_v10 = vpop.f32.mrb[15].mxu1 }
 0xb66   : > { %v905_v11 = vmul.f32 %v904_v9, %v2177_v22 }
 0xb68   : > { %v906_v12 = vadd.f32 %v905_v11, %v795_v41 }
 0xb6a   : > { %v907_v13 = vmul.f32 %v906_v12, %v2180_v24 }
 0xb6c   : > { %v908_v14 = vadd.f32 %v907_v13, %v903_v5 }
 0xb6e   : > { %v909_v15 = vmax.f32 %v2184_v27, %v908_v14 }
 0xb70   : > { %v910_v16 = vmin.f32 %v2187_v29, %v909_v15 }
 0xb72   : > { %v911_v17 = vsub.f32 %v908_v14, %v910_v16 }
 0xb74   : > { %v912_v18 = vsub.f32 %v2173_v7, %v911_v17 }
 0xb76   : > { %v913_v19 = vsub.f32 %v912_v18, %v907_v13 }
 0xb78   : > { %v914_v20 = vpack.c.bf16 %v913_v19, %v913_v19 }
 0xb7a   : > { %v916_v21 = vsel %vm546_vm2, %v914_v20, 0 }
 0xb7b   : > { %1630 = vmatpush3.bf16.xpose.msra.mxu0 %v916_v21 }
 0xb7c   : > { %1641 = vmatprep.subr.bf16.mxu0 %v1964_v0 }
 0xb82   : > { %1632 = vmatmul.mubr.msk.bf16.vlgmr.msra.gmra.mrb[16].mxu0 %vm546_vm2, %v914_v20 }
 0xb83   : > { %1643 = vmatprep.mubr.msk.bf16.mxu0 %vm1965_vm0, %v1964_v0 }
 0xc55   : > { %v952_v23 = vpop.f32.mrb[16].mxu0 }
 0xc56   : > { %v958_v25 = vmul.f32 0.35355338, %v952_v23  ;;  %v1633_v26 = vpop.f32.mrb[17].mxu0 }
 0xc57   : > { %v955_v28 = vpop.f32.mrb[18].mxu0 }
 0xc58   : > { %v1634_v30 = vpop.f32.mrb[19].mxu0  ;;  %v959_v31 = vsel %vm546_vm2, %v958_v25, -inf }
 0xc59   : > { %960 = vmax.xlane.f32.xlu1 %v959_v31 }
 0xce6   : > { %v961_v32 = vpop.xlane.xlu1 %960 }
 0xce7   : > { %v962_v33 = vsub.f32 %v958_v25, %v961_v32 }
 0xce9   : > { %v963_v34 = vmul.f32 1.442695, %v962_v33 }
 0xceb   : > { %1800 = vpow2.f32 %v963_v34 }
 0xcf5   : > { %v1801_v35 = vpop.eup %1800 }
 0xcf6   : > { %v965_v36 = vsel %vm546_vm2, %v1801_v35, 0.0 }
 0xcf7   : > { %966 = vadd.xlane.f32.xlu0 %v965_v36 }
 0xd84   : > { %v967_v37 = vpop.xlane.xlu0 %966 }
 0xd85   : > { %1802 = vrcp.f32 %v967_v37 }
 0xd8f   : > { %v1803_v38 = vpop.eup %1802 }
 0xd90   : > { %v969_v39 = vmul.f32 %v1803_v38, %v1801_v35 }
 0xd92   : > { %v970_v40 = vpack.c.bf16 %v969_v39, %v969_v39 }
 0xd94   : > { %1638 = vmatmul.mubr.msk.bf16.vlgmr.msra.gmra.mrb[16].mxu1 %vm546_vm2, %v970_v40 }
 0xd95   : > { %1648 = vmatpush3.bf16.msra.mxu1 %v2212_v51  ;;  %1649 = vmatprep.mubr.msk.bf16.mxu1 %vm1965_vm0, %v1964_v0 }
 0xd96   : > { %1659 = vmatprep.subr.bf16.mxu1 %v1964_v0 }
 0xe67   : > { %v1008_v41 = vpop.f32.mrb[16].mxu1 }
 0xe68   : > { %v1014_v42 = vsub.f32 %v2173_v7, %v1008_v41  ;;  %v1639_v43 = vpop.f32.mrb[17].mxu1 }
 0xe69   : > { %v1011_v44 = vpop.f32.mrb[18].mxu1 }
 0xe6a   : > { %v1015_v45 = vsub.f32 %v1014_v42, %v911_v17  ;;  %v1640_v46 = vpop.f32.mrb[19].mxu1 }
 0xe6b   : > { %v1966_v46 = vmov (!%p1532_p6), 0.0  }
 0xe6c   : > { %v1016_v47 = vmul.f32 %v1015_v45, %v2177_v22  ;;  %1241 = vst.msk [vmem:[#allocation2] sm:$0xff] (!%p1532_p6), %vm437_vm1, %v1966_v46 }
 0xe6e   : > { %v1017_v48 = vadd.f32 %v1016_v47, %v906_v12 }
 0xe70   : > { %v1018_v49 = vmul.f32 %v1017_v48, %v2180_v24 }
 0xe72   : > { %v1019_v50 = vadd.f32 %v1018_v49, %v1014_v42 }
 0xe74   : > { %v1020_v52 = vmax.f32 %v2184_v27, %v1019_v50 }
 0xe76   : > { %v1021_v53 = vmin.f32 %v2187_v29, %v1020_v52 }
 0xe78   : > { %v1022_v54 = vsub.f32 %v1019_v50, %v1021_v53 }
 0xe7a   : > { %v1023_v55 = vsub.f32 %v2173_v7, %v1022_v54 }
 0xe7c   : > { %v1024_v56 = vsub.f32 %v1023_v55, %v1018_v49 }
 0xe7e   : > { %v1025_v57 = vpack.c.bf16 %v1024_v56, %v1024_v56 }
 0xe80   : > { %v1027_v58 = vsel %vm546_vm2, %v1025_v57, 0 }
 0xe81   : > { %1642 = vmatpush3.bf16.xpose.msra.mxu0 %v1027_v58 }
 0xe82   : > { %1653 = vmatprep.subr.bf16.mxu0 %v1964_v0 }
 0xe88   : > { %1644 = vmatmul.mubr.msk.bf16.vlgmr.msra.gmra.mrb[20].mxu0 %vm546_vm2, %v1025_v57 }
 0xe89   : > { %1655 = vmatprep.mubr.msk.bf16.mxu0 %vm1965_vm0, %v1964_v0 }
 0xf5b   : > { %v1063_v59 = vpop.f32.mrb[20].mxu0 }
 0xf5c   : > { %v1069_v60 = vmul.f32 0.35355338, %v1063_v59  ;;  %v1645_v61 = vpop.f32.mrb[21].mxu0 }
 0xf5d   : > { %v1066_v62 = vpop.f32.mrb[22].mxu0 }
 0xf5e   : > { %v1646_v63 = vpop.f32.mrb[23].mxu0  ;;  %v1070_v1 = vsel %vm546_vm2, %v1069_v60, -inf }
 0xf5f   : > { %1071 = vmax.xlane.f32.xlu1 %v1070_v1 }
 0xfec   : > { %v1072_v2 = vpop.xlane.xlu1 %1071 }
 0xfed   : > { %v1073_v3 = vsub.f32 %v1069_v60, %v1072_v2 }
 0xfef   : > { %v1074_v4 = vmul.f32 1.442695, %v1073_v3 }
 0xff1   : > { %1804 = vpow2.f32 %v1074_v4 }
 0xffb   : > { %v1805_v5 = vpop.eup %1804 }
 0xffc   : > { %v1076_v6 = vsel %vm546_vm2, %v1805_v5, 0.0 }
 0xffd   : > { %1077 = vadd.xlane.f32.xlu0 %v1076_v6 }
0x108a   : > { %v1078_v8 = vpop.xlane.xlu0 %1077 }
0x108b   : > { %1806 = vrcp.f32 %v1078_v8 }
0x1095   : > { %v1807_v9 = vpop.eup %1806 }
0x1096   : > { %v1080_v10 = vmul.f32 %v1807_v9, %v1805_v5 }
0x1098   : > { %v1081_v11 = vpack.c.bf16 %v1080_v10, %v1080_v10 }
0x109a   : > { %1650 = vmatmul.mubr.msk.bf16.vlgmr.msra.gmra.mrb[20].mxu1 %vm546_vm2, %v1081_v11 }
0x109b   : > { %1660 = vmatpush3.bf16.msra.mxu1 %v2212_v51  ;;  %1661 = vmatprep.mubr.msk.bf16.mxu1 %vm1965_vm0, %v1964_v0 }
0x116d   : > { %v1119_v12 = vpop.f32.mrb[20].mxu1 }
0x116e   : > { %v1125_v13 = vsub.f32 %v2173_v7, %v1119_v12  ;;  %v1651_v14 = vpop.f32.mrb[21].mxu1 }
0x116f   : > { %v1122_v15 = vpop.f32.mrb[22].mxu1 }
0x1170   : > { %v1126_v16 = vsub.f32 %v1125_v13, %v1022_v54  ;;  %v1652_v17 = vpop.f32.mrb[23].mxu1 }
0x1172   : > { %v1127_v18 = vmul.f32 %v1126_v16, %v2177_v22 }
0x1174   : > { %v1128_v19 = vadd.f32 %v1127_v18, %v1017_v48 }
0x1176   : > { %v1129_v20 = vmul.f32 %v1128_v19, %v2180_v24 }
0x1178   : > { %v1130_v21 = vadd.f32 %v1129_v20, %v1125_v13 }
0x117a   : > { %v1131_v23 = vmax.f32 %v2184_v27, %v1130_v21 }
0x117c   : > { %v1132_v51 = vmin.f32 %v2187_v29, %v1131_v23 }
0x117e   : > { %v1133_v25 = vsub.f32 %v1130_v21, %v1132_v51 }
0x1180   : > { %v1134_v26 = vsub.f32 %v2173_v7, %v1133_v25 }
0x1182   : > { %v1135_v28 = vsub.f32 %v1134_v26, %v1129_v20 }
0x1184   : > { %v1136_v30 = vpack.c.bf16 %v1135_v28, %v1135_v28 }
0x1186   : > { %v1138_v31 = vsel %vm546_vm2, %v1136_v30, 0 }
0x1187   : > { %1654 = vmatpush3.bf16.xpose.msra.mxu0 %v1138_v31 }
0x118e   : > { %1656 = vmatmul.mubr.msk.bf16.vlgmr.msra.gmra.mrb[24].mxu0 %vm546_vm2, %v1136_v30 }
0x1261   : > { %v1174_v32 = vpop.f32.mrb[24].mxu0 }
0x1262   : > { %v1180_v22 = vmul.f32 0.35355338, %v1174_v32  ;;  %v1657_v24 = vpop.f32.mrb[25].mxu0 }
0x1263   : > { %v1177_v33 = vpop.f32.mrb[26].mxu0 }
0x1264   : > { %v1658_v34 = vpop.f32.mrb[27].mxu0  ;;  %v1181_v27 = vsel %vm546_vm2, %v1180_v22, -inf }
0x1265   : > { %1182 = vmax.xlane.f32.xlu1 %v1181_v27 }
0x12f2   : > { %v1183_v29 = vpop.xlane.xlu1 %1182 }
0x12f3   : > { %v1184_v35 = vsub.f32 %v1180_v22, %v1183_v29 }
0x12f5   : > { %v1185_v7 = vmul.f32 1.442695, %v1184_v35 }
0x12f7   : > { %1808 = vpow2.f32 %v1185_v7 }
0x1301   : > { %v1809_v36 = vpop.eup %1808 }
0x1302   : > { %v1187_v37 = vsel %vm546_vm2, %v1809_v36, 0.0 }
0x1303   : > { %1188 = vadd.xlane.f32.xlu0 %v1187_v37 }
0x1390   : > { %v1189_v38 = vpop.xlane.xlu0 %1188 }
0x1391   : > { %1810 = vrcp.f32 %v1189_v38 }
0x139b   : > { %v1811_v39 = vpop.eup %1810 }
0x139c   : > { %v1191_v40 = vmul.f32 %v1811_v39, %v1809_v36 }
0x139e   : > { %1236 = vst.msk [vmem:[%s386_s29] sm:$0xff] %vm546_vm2, %v1191_v40  ;;  %v1192_v41 = vpack.c.bf16 %v1191_v40, %v1191_v40 }
0x13a0   : > { %1662 = vmatmul.mubr.msk.bf16.vlgmr.msra.gmra.mrb[24].mxu1 %vm546_vm2, %v1192_v41 }
0x1470   : > { %1240 = sbr.rel (%p1532_p6) target bundleno = 5239 (0x1477), region = 52 }
0x1473   : > { %v1230_v42 = vpop.f32.mrb[24].mxu1 }
0x1474   : > { %v1663_v43 = vpop.f32.mrb[25].mxu1 }
0x1475   : > { %v1233_v44 = vpop.f32.mrb[26].mxu1 }
0x1476   : > { %v1664_v45 = vpop.f32.mrb[27].mxu1 }
0x1477 PF: > { %1665 = vmatprep.subr.bf16.mxu0 %v1964_v0  ;;  %v1244_v47 = vld [vmem:[%s2159_s10] sm:$0xf]  ;;  %1667 = vmatprep.mubr.msk.bf16.mxu0 %vm1965_vm0, %v1964_v0  ;;  %v1243_v49 = vpack.c.bf16 %v1230_v42, %v1230_v42  ;;  %p1534_p8 = scmp.ne.s32.totalorder %s1946_s11, 3 }
0x1478   : > { %v1249_v48 = vsel %vm636_vm3, %v1244_v47, 0  ;;  %v1242_v50 = vld [vmem:[#allocation2] sm:$0xff] }
0x1479   : > { %1666 = vmatpush3.bf16.msra.mxu0 %v1249_v48  ;;  %v1535_v0 = vld [vmem:[%s2430_s6] ss:$0 sm:$0xff] (!%p1534_p8) }
0x147c   : > { %1668 = vmatmul.mubr.msk.bf16.vlgmr.msra.gmra.mrb[28].mxu0 %vm546_vm2, %v1243_v49 }
0x154c   : > { %1296 = sbr.rel (%p1534_p8) target bundleno = 5469 (0x155d), region = 56 }
0x154f   : > { %v1285_v52 = vpop.f32.mrb[28].mxu0 }
0x1550   : > { %v1291_v53 = vadd.f32 %v1285_v52, %v1242_v50  ;;  %v1669_v54 = vpop.f32.mrb[29].mxu0 }
0x1551   : > { %v1288_v55 = vpop.f32.mrb[30].mxu0 }
0x1552   : > { %1292 = vst.msk [vmem:[#allocation2] sm:$0xff] %vm437_vm1, %v1291_v53  ;;  %v1670_v56 = vpop.f32.mrb[31].mxu0 }
0x1559   : > { %v1297_v57 = vld [vmem:[#allocation2] sm:$0xff] }
0x155a   : > { %v1305_v58 = vadd.f32 %v1535_v0, %v1297_v57 }
0x155c   : > { %1306 = vst.msk [vmem:[%s379_s13] sm:$0xff] %vm437_vm1, %v1305_v58 }
0x155d PF: > { %s1538_s21 = sshll.u32 %s1950_s12, 7  ;;  %s1326_s14 = sshll.u32 %s379_s13, 4  ;;  %s1327_s14 = int_to_ptr.vmem [resolvable:$true] %s1326_s14 }
0x155e   : > { %s2334_s17 = scalar_lea.hbm %s2431_s7, %s1538_s21  ;;  %s2463_s25 = sand.u32 1, %s1938_s9  }
0x155f   : > { %s1308_s18 = scalar_lea.sflag [#allocation4], %s2463_s25  ;;  %s1812_s8 = scalar_lea.vmem %s1327_s14, 128 }
0x1560   : > { %p1813_p9 = scmp.ne.s32.totalorder %s1327_s14, %s1812_s8  ;;  %s1967_s10 = smov [#allocation3]  }
0x1561   : > { %s1816_s19 = sshll.u32 %s1967_s10, 4  ;;  %s1817_s19 = int_to_ptr.vmem [resolvable:$false] %s1816_s19 }
0x1562   : > { %p1814_p10 = pnand %p1813_p9, %p2085_p3  ;;  %s1818_s23 = scalar_lea.vmem %s1817_s19, 256 }
0x1563   : > { %p1819_p0 = scmp.lt.s32.totalorder %s1327_s14, %s1817_s19  ;;  %p1820_p1 = scmp.lt.s32.totalorder %s1818_s23, %s1812_s8 }
0x1564   : > { %p1815_p11 = pneg %p1814_p10 }
0x1565   : > { %p1821_p4 = por %p1820_p1, %p1819_p0 }
0x1567   : > { %p1822_p2 = pnand %p1821_p4, %p1815_p11 }
0x1569   : > { %1825 = shalt.err (!%p1822_p2)
}
0x156a   : > { %s1826_s20 = scalar_lea.hbm %s2334_s17, 128  ;;  %s1830_s24 = scalar_lea.hbm %s2431_s7, 256 }
0x156b   : > { %p1827_p5 = scmp.ne.s32.totalorder %s2334_s17, %s1826_s20  ;;  %p1831_p9 = scmp.lt.u32.totalorder %s2334_s17, %s2431_s7 }
0x156c   : > { %p1832_p10 = scmp.lt.u32.totalorder %s1830_s24, %s1826_s20  ;;  %p1834_p0 = scmp.lt.u32.totalorder %s1826_s20, %s2334_s17 }
0x156d   : > { %p1828_p6 = pnand %p1827_p5, %p2085_p3 }
0x156e   : > { %p1833_p11 = por %p1832_p10, %p1831_p9 }
0x156f   : > { %p1829_p8 = pneg %p1828_p6 }
0x1570   : > { %p1835_p1 = por %p1834_p0, %p1833_p11 }
0x1572   : > { %p1836_p4 = pnand %p1835_p1, %p1829_p8 }
0x1574   : > { %1839 = shalt.err (!%p1836_p4)
}
0x1575   : > { %1677 = dma.vmem_to_hbm [thread:$0]  (%p2085_p3), %s1327_s14, 128, %s2334_s17, %s1308_s18  }
0x1576   : > { %s1539_s23 = sshll.u32 %s1950_s12, 2  ;;  %s1341_s8 = sshll.u32 %s386_s29, 4  ;;  %s2361_s8 = int_to_ptr.vmem [resolvable:$true] %s1341_s8 }
0x1577   : > { %s1337_s10 = sadd.s32 %s1946_s11, %s1539_s23  ;;  %s2464_s22 = sld [smem:[#allocation20_spill]] }
0x1578   : > { %s1540_s19 = sshll.u32 %s1337_s10, 7  ;;  %s2465_s24 = sand.u32 1, %s1926_s28  }
0x1579   : > { %s1313_s16 = scalar_lea.sflag [#allocation6], %s2465_s24  ;;  %s1840_s25 = scalar_lea.vmem %s2361_s8, 128 }
0x157a   : > { %p1841_p2 = scmp.ne.s32.totalorder %s2361_s8, %s1840_s25  ;;  %s1968_s12 = smov [#allocation5]  }
0x157b   : > { %s1844_s27 = sshll.u32 %s1968_s12, 4  ;;  %s1845_s27 = int_to_ptr.vmem [resolvable:$false] %s1844_s27 }
0x157c   : > { %p1842_p3 = pnand %p1841_p2, %p2114_p12  ;;  %s1846_s11 = scalar_lea.vmem %s1845_s27, 256 }
0x157d   : > { %s1339_s21 = scalar_lea.hbm %s2464_s22, %s1540_s19  ;;  %p1847_p6 = scmp.lt.s32.totalorder %s2361_s8, %s1845_s27 }
0x157e   : > { %p1843_p5 = pneg %p1842_p3  ;;  %p1848_p8 = scmp.lt.s32.totalorder %s1846_s11, %s1840_s25 }
0x1580   : > { %p1849_p9 = por %p1848_p8, %p1847_p6 }
0x1582   : > { %p1850_p10 = pnand %p1849_p9, %p1843_p5 }
0x1584   : > { %1853 = shalt.err (!%p1850_p10)
}
0x1585   : > { %s1854_s29 = scalar_lea.hbm %s1339_s21, 128  ;;  %s1858_s18 = scalar_lea.hbm %s2464_s22, 1024 }
0x1586   : > { %p1855_p11 = scmp.ne.s32.totalorder %s1339_s21, %s1854_s29  ;;  %p1859_p4 = scmp.lt.u32.totalorder %s1339_s21, %s2464_s22 }
0x1587   : > { %p1860_p2 = scmp.lt.u32.totalorder %s1858_s18, %s1854_s29  ;;  %p1862_p13 = scmp.lt.u32.totalorder %s1854_s29, %s1339_s21 }
0x1588   : > { %p1856_p0 = pnand %p1855_p11, %p2114_p12 }
0x1589   : > { %p1861_p3 = por %p1860_p2, %p1859_p4 }
0x158a   : > { %p1857_p1 = pneg %p1856_p0 }
0x158b   : > { %p1863_p6 = por %p1862_p13, %p1861_p3 }
0x158d   : > { %p1864_p5 = pnand %p1863_p6, %p1857_p1 }
0x158f   : > { %1867 = shalt.err (!%p1864_p5)
}
0x1590   : > { %1678 = dma.vmem_to_hbm [thread:$0]  (%p2114_p12), %s2361_s8, 128, %s1339_s21, %s1313_s16  }
0x1591 PF: > { %s2466_s19 = sld [smem:[#allocation11_spill]]  ;;  %p1688_p8 = scmp.ge.s32.totalorder %s1962_s15, 2 }
0x1593   : > { %p1682_p9 = pnand %p1688_p8, %p2102_p7 }
0x1597   : > { %s1353_s20 = sand.u32 1, %s2466_s19  }
0x1598   : > { %s1354_s13 = scalar_lea.sflag [#allocation4], %s1353_s20 }
0x1599   : > { %1913 = dma.done.wait (!%p1682_p9), %s1354_s13, 128  }
0x159a   : > { %1915 = vsyncadd (!%p1682_p9), %s1354_s13, 4294967168  ;;  %s2467_s24 = sld [smem:[#allocation9_spill]]  ;;  %s2468_s25 = sld [smem:[#allocation19_spill]] }
0x15a0   : > { %s1362_s12 = sand.u32 1, %s2467_s24   ;;  %p2469_p13 = scmp.ne.s32.totalorder %s2468_s25, 0 }
0x15a1   : > { %s1363_s27 = scalar_lea.sflag [#allocation6], %s1362_s12 }
0x15a2   : > { %p1685_p10 = pnand %p1688_p8, %p2469_p13 }
0x15a4   : > { %1917 = dma.done.wait (!%p1685_p10), %s1363_s27, 128  }
0x15a5   : > { %1919 = vsyncadd (!%p1685_p10), %s1363_s27, 4294967168  ;;  %s25_s15 = sadd.s32 1, %s1962_s15   ;;  %s2470_s30 = sld [smem:[#allocation10_spill]] }
0x15a6   : > { %p22_p12 = scmp.ge.s32.totalorder %s25_s15, 10   ;;  %s2471_s29 = sld [smem:[#allocation18_spill]] }
0x15a7   : > { %s2472_s26 = sld [smem:[#allocation12_spill]]  ;;  %s2473_s10 = sld [smem:[#allocation17_spill]] }
0x15a8   : > { %s2474_s11 = sld [smem:[#allocation13_spill]]  ;;  %s2475_s12 = sld [smem:[#allocation14_spill]] }
0x15a9   : > { %s2476_s13 = sld [smem:[#allocation15_spill]]  ;;  %s2477_s14 = sld [smem:[#allocation16_spill]] }
0x15aa   : > { %s2478_s27 = smov %s1926_s28  ;;  %24 = sbr.rel (!%p22_p12) target bundleno = 11 (0xb), region = 123 }
0x15ab   : > { %s2479_s28 = smov %s2470_s30  ;;  %s2480_s30 = smov %s1938_s9 }
0x15ad   : > { %s2481_s9 = smov %s2472_s26 }
0x15b1   :  { %1368 = vsyncpa [#allocation4], 1 }
0x15b2   :  { %1370 = vsyncpa [#allocation4 + $0x1], 1 }
0x15b3   :  { %1371 = vsyncpa [#allocation6], 1 }
0x15b4   :  { %1373 = vsyncpa [#allocation6 + $0x1], 1 }

</bundles_post_ra>
